<compile_context>
chip_gen: v7x
topology: tpu7x:2x2x1
jax: 0.10.0
libtpu: 0.0.40
codegen_flags: <defaults>
</compile_context>

<pallas_src>
import jax
import jax.numpy as jnp
from jax.experimental import pallas as pl
from jax.experimental.pallas import tpu as pltpu

# Hyper-parameters (module __init__ defaults), baked in as Python constants.
GAMMA_NEG = 4.0   # integer-valued -> pow strength-reduced to squarings below
GAMMA_POS = 1.0
CLIP = 0.05
EPS = 1e-8


def _make_asl_kernel(chunk_rows, n_chunks):
    """Builds the kernel with static chunking baked in via closure."""

    def kernel(x_ref, y_ref, out_ref, acc_ref):
        i = pl.program_id(1)
        C = x_ref.shape[1]

        @pl.when(i == 0)
        def _init():
            acc_ref[...] = jnp.zeros_like(acc_ref)

        def process(r0):
            # All math in f32 regardless of input dtypes (bf16 x / int8 y OK).
            x = x_ref[pl.ds(r0, chunk_rows), :].astype(jnp.float32)
            y = y_ref[pl.ds(r0, chunk_rows), :].astype(jnp.float32)
            is_pos = y > 0.0  # binary multi-label targets

            # sigmoid via a single EUP tanh push: sig(x) == 0.5*(tanh(x/2)+1)
            xs_pos = 0.5 * (jnp.tanh(0.5 * x) + 1.0)
            # asymmetric clipping (clamp max=1 on the negative probability)
            xs_neg = jnp.minimum((1.0 - xs_pos) + CLIP, 1.0)

            # Binary y:  y*log(clamp(xs_pos)) + (1-y)*log(clamp(xs_neg))
            #         == log(clamp(where(y, xs_pos, xs_neg)))   (one log)
            p_sel = jnp.where(is_pos, xs_pos, xs_neg)
            log_term = jnp.log(jnp.maximum(p_sel, EPS))

            # Focusing weight (1-pt)^gamma, gamma in {1, 4}: select between
            # (1-pt) and ((1-pt)^2)^2 — no exp/log pow.
            one_minus_pt = 1.0 - p_sel
            sq = one_minus_pt * one_minus_pt
            w = jnp.where(is_pos, one_minus_pt, sq * sq)

            contrib = log_term * w                       # (chunk_rows, C)
            if chunk_rows > 8:
                # Fold sublane groups into an (8, C) partial (VPU adds only;
                # reshape splits the row dim exactly on (8,128) tile bounds).
                contrib = contrib.reshape(chunk_rows // 8, 8, C).sum(axis=0)
            acc_ref[...] += contrib

        if n_chunks == 1:
            process(0)
        else:
            def body(k, carry):
                process(pl.multiple_of(k * chunk_rows, 8))
                return carry
            jax.lax.fori_loop(0, n_chunks, body, 0)

        @pl.when(i == pl.num_programs(1) - 1)
        def _finalize():
            out_ref[...] = jnp.broadcast_to(jnp.sum(acc_ref[...]), out_ref.shape)

    return kernel


def _row_align(dtype):
    """Native sublane tile height for a dtype: f32 -> 8, bf16 -> 16, int8 -> 32."""
    return max(8, 32 // max(1, jnp.dtype(dtype).itemsize))


def _default_num_parallel():
    """2 on dual-TensorCore chips (v7x), 1 on single-TC v5e/v6e."""
    try:
        kind = jax.devices()[0].device_kind.lower()
    except Exception:
        return 1
    return 2 if "v7" in kind else 1


def asymmetric_loss_multilabel(
    x,
    y,
    *,
    target_block_bytes=4 * 1024 * 1024,   # DMA tile size per x stream
    chunk_bytes=1 * 1024 * 1024,          # f32 compute-chunk size inside the kernel
    num_parallel=None,
    reduction="mean",
):
    """Pallas implementation of AsymmetricLossMultiLabel.forward.

    x: logits [B, C] (f32 or bf16); y: *binary* targets [B, C] (f32/int8/bool).
    Supports reduction='mean' (default) and 'sum'.
    """
    assert x.shape == y.shape and x.ndim == 2
    B, C = x.shape
    assert B % 8 == 0 and C % 128 == 0, "pick TPU-friendly shapes (B%8==0, C%128==0)"

    # ---- parallel batch split (dual-TC chips); serial loop otherwise --------
    if num_parallel is None:
        num_parallel = _default_num_parallel()
    P = max(1, int(num_parallel))
    while P > 1 and (B % P != 0 or (B // P) % 8 != 0):
        P -= 1
    rows_per_part = B // P

    # ---- row alignment from the native tiles of the (possibly narrow) dtypes
    align = max(_row_align(x.dtype), _row_align(y.dtype))
    while align > 8 and rows_per_part % align != 0:
        align //= 2

    # ---- DMA tile (block) sizing --------------------------------------------
    itemsize = max(x.dtype.itemsize, y.dtype.itemsize)
    max_rows = max(align, (target_block_bytes // (C * itemsize)) // align * align)
    block_rows = min(rows_per_part, max_rows)
    while rows_per_part % block_rows != 0:   # terminates: `align` always divides
        block_rows -= align
    blocks_per_part = rows_per_part // block_rows

    # ---- compute-chunk sizing (bounds f32 element-wise temporaries) ---------
    max_chunk = max(8, (chunk_bytes // (C * 4)) // 8 * 8)
    chunk_rows = min(block_rows, max_chunk)
    while block_rows % chunk_rows != 0:      # terminates at 8
        chunk_rows -= 8
    n_chunks = block_rows // chunk_rows

    in_spec = pl.BlockSpec((block_rows, C), lambda p, i: (p * blocks_per_part + i, 0))

    # ---- VMEM budget: 2 inputs x 2 pipeline buffers + f32 temporaries + acc --
    x_blk = block_rows * C * x.dtype.itemsize
    y_blk = block_rows * C * y.dtype.itemsize
    temp_bytes = 6 * chunk_rows * C * 4
    acc_bytes = 8 * C * 4
    need = 2 * (x_blk + y_blk) + temp_bytes + acc_bytes + (2 << 20)
    vmem_limit = int(min(max(need, 32 << 20), 56 << 20))

    bytes_in = x.size * x.dtype.itemsize + y.size * y.dtype.itemsize
    partials = pl.pallas_call(
        _make_asl_kernel(chunk_rows, n_chunks),
        out_shape=jax.ShapeDtypeStruct((P, 1, 1), jnp.float32),
        grid_spec=pltpu.PrefetchScalarGridSpec(
            num_scalar_prefetch=0,
            grid=(P, blocks_per_part),
            in_specs=[in_spec, in_spec],
            out_specs=pl.BlockSpec((1, 1, 1), lambda p, i: (p, 0, 0)),
            scratch_shapes=[pltpu.VMEM((8, C), jnp.float32)],
        ),
        compiler_params=pltpu.CompilerParams(
            dimension_semantics=("parallel", "arbitrary"),
            vmem_limit_bytes=vmem_limit,
        ),
        cost_estimate=pl.CostEstimate(
            flops=12 * x.size,
            transcendentals=2 * x.size,      # one tanh + one log per element
            bytes_accessed=bytes_in + P * 4,
        ),
    )(x, y)

    total = jnp.sum(partials)
    if reduction == "mean":
        return -(total / jnp.float32(x.size))
    if reduction == "sum":
        return -total
    # TODO(synk): reduction='none' (per-element loss map) needs a non-reducing
    # variant that writes the loss block back out; not wired up here.
    raise NotImplementedError("only 'mean' and 'sum' reductions are implemented")


def _reference(x, y):
    """Pure-JAX reference mirroring the PyTorch module (reduction='mean')."""
    x = x.astype(jnp.float32)
    y = y.astype(jnp.float32)
    xs_pos = jax.nn.sigmoid(x)
    xs_neg = jnp.minimum((1.0 - xs_pos) + CLIP, 1.0)
    loss = y * jnp.log(jnp.maximum(xs_pos, EPS)) + (1.0 - y) * jnp.log(
        jnp.maximum(xs_neg, EPS)
    )
    pt = xs_pos * y + xs_neg * (1.0 - y)
    gamma = GAMMA_POS * y + GAMMA_NEG * (1.0 - y)
    loss = loss * jnp.power(1.0 - pt, gamma)
    return -jnp.mean(loss)


if __name__ == "__main__":
    key = jax.random.PRNGKey(0)
    kx, ky, kx2, ky2 = jax.random.split(key, 4)

    # batch=16 samples, 128 labels (multi-label binarized vector)
    B, C = 16, 128
    x = jax.random.normal(kx, (B, C), dtype=jnp.float32) * 2.0        # logits
    y = (jax.random.uniform(ky, (B, C)) < 0.3).astype(jnp.int8)       # binary targets (narrow)

    ref = _reference(x, y)

    # 1) default path (f32 logits, int8 targets)
    out = jax.block_until_ready(asymmetric_loss_multilabel(x, y))
    assert jnp.allclose(out, ref, rtol=5e-5, atol=5e-6), (out, ref)

    # 2) narrow-dtype logits path (bf16 x), compared against reference on same data
    xb = x.astype(jnp.bfloat16)
    out_b = jax.block_until_ready(asymmetric_loss_multilabel(xb, y))
    ref_b = _reference(xb.astype(jnp.float32), y)
    assert jnp.allclose(out_b, ref_b, rtol=1e-4, atol=1e-5), (out_b, ref_b)

    # 3) multi-block reduction axis + in-kernel chunk loop
    B2 = 32
    x2 = jax.random.normal(kx2, (B2, C), dtype=jnp.float32) * 2.0
    y2 = (jax.random.uniform(ky2, (B2, C)) < 0.3).astype(jnp.float32)
    ref2 = _reference(x2, y2)
    out2 = jax.block_until_ready(
        asymmetric_loss_multilabel(
            x2, y2, target_block_bytes=16 * C * 4, chunk_bytes=1, num_parallel=1
        )
    )
    assert jnp.allclose(out2, ref2, rtol=5e-5, atol=5e-6), (out2, ref2)

    # 4) two-way parallel batch split
    out_p = jax.block_until_ready(asymmetric_loss_multilabel(x, y, num_parallel=2))
    assert jnp.allclose(out_p, ref, rtol=5e-5, atol=5e-6), (out_p, ref)

    print("KERNEL_OK")
</pallas_src>

<mosaic_0001>
module attributes {stable_mosaic.version = 11 : i64} {
  func.func @kernel(%arg0: i32, %arg1: i32, %arg2: memref<16x128xf32, #tpu.memory_space<vmem>>, %arg3: memref<16x128xi8, #tpu.memory_space<vmem>>, %arg4: memref<1x1x1xf32, #tpu.memory_space<vmem>>, %arg5: memref<8x128xf32, #tpu.memory_space<vmem>>) attributes {dimension_semantics = [#tpu.dimension_semantics<parallel>, #tpu.dimension_semantics<arbitrary>], iteration_bounds = array<i64: 1, 1>, scalar_prefetch = 0 : i64, scratch_operands = 1 : i64, tpu.core_type = #tpu.core_type<tc>, window_params = [{transform_indices = @transform_0, window_bounds = array<i64: 16, 128>}, {transform_indices = @transform_1, window_bounds = array<i64: 16, 128>}, {transform_indices = @transform_2, window_bounds = array<i64: 1, 1, 1>}]} {
    %c0_i32 = arith.constant 0 : i32
    %0 = arith.cmpi eq, %arg1, %c0_i32 : i32
    %1 = arith.extui %0 : i1 to i32
    %c0_i32_0 = arith.constant 0 : i32
    %2 = arith.cmpi ne, %1, %c0_i32_0 : i32
    scf.if %2 {
      %cst_19 = arith.constant 0.000000e+00 : f32
      %39 = vector.broadcast %cst_19 : f32 to vector<8x128xf32>
      %c0_20 = arith.constant 0 : index
      %c0_21 = arith.constant 0 : index
      %40 = vector.load %arg5[%c0_20, %c0_21] : memref<8x128xf32, #tpu.memory_space<vmem>>, vector<8x128xf32>
      tpu.vector_store %arg5[%c0_20, %c0_21], %39 {strides = array<i32>} : memref<8x128xf32, #tpu.memory_space<vmem>>, vector<8x128xf32>,
    } else {
    }
    %c0 = arith.constant 0 : index
    %c0_1 = arith.constant 0 : index
    %3 = vector.load %arg2[%c0, %c0_1] : memref<16x128xf32, #tpu.memory_space<vmem>>, vector<16x128xf32>
    %c0_2 = arith.constant 0 : index
    %c0_3 = arith.constant 0 : index
    %4 = vector.load %arg3[%c0_2, %c0_3] : memref<16x128xi8, #tpu.memory_space<vmem>>, vector<16x128xi8>
    %5 = arith.sitofp %4 : vector<16x128xi8> to vector<16x128xf32>
    %cst = arith.constant 0.000000e+00 : f32
    %6 = vector.broadcast %cst : f32 to vector<16x128xf32>
    %7 = arith.cmpf ogt, %5, %6 : vector<16x128xf32>
    %cst_4 = arith.constant 5.000000e-01 : f32
    %8 = vector.broadcast %cst_4 : f32 to vector<16x128xf32>
    %9 = arith.mulf %8, %3 : vector<16x128xf32>
    %10 = math.tanh %9 : vector<16x128xf32>
    %cst_5 = arith.constant 1.000000e+00 : f32
    %11 = vector.broadcast %cst_5 : f32 to vector<16x128xf32>
    %12 = arith.addf %10, %11 : vector<16x128xf32>
    %cst_6 = arith.constant 5.000000e-01 : f32
    %13 = vector.broadcast %cst_6 : f32 to vector<16x128xf32>
    %14 = arith.mulf %13, %12 : vector<16x128xf32>
    %cst_7 = arith.constant 1.000000e+00 : f32
    %15 = vector.broadcast %cst_7 : f32 to vector<16x128xf32>
    %16 = arith.subf %15, %14 : vector<16x128xf32>
    %cst_8 = arith.constant 5.000000e-02 : f32
    %17 = vector.broadcast %cst_8 : f32 to vector<16x128xf32>
    %18 = arith.addf %16, %17 : vector<16x128xf32>
    %cst_9 = arith.constant 1.000000e+00 : f32
    %19 = vector.broadcast %cst_9 : f32 to vector<16x128xf32>
    %20 = arith.minimumf %18, %19 : vector<16x128xf32>
    %21 = arith.select %7, %14, %20 : vector<16x128xi1>, vector<16x128xf32>
    %cst_10 = arith.constant 9.99999993E-9 : f32
    %22 = vector.broadcast %cst_10 : f32 to vector<16x128xf32>
    %23 = arith.maximumf %21, %22 : vector<16x128xf32>
    %24 = math.log %23 : vector<16x128xf32>
    %cst_11 = arith.constant 1.000000e+00 : f32
    %25 = vector.broadcast %cst_11 : f32 to vector<16x128xf32>
    %26 = arith.subf %25, %21 : vector<16x128xf32>
    %27 = arith.mulf %26, %26 : vector<16x128xf32>
    %28 = arith.mulf %27, %27 : vector<16x128xf32>
    %29 = arith.select %7, %26, %28 : vector<16x128xi1>, vector<16x128xf32>
    %30 = arith.mulf %24, %29 : vector<16x128xf32>
    %31 = vector.shape_cast %30 : vector<16x128xf32> to vector<2x8x128xf32>
    %cst_12 = arith.constant dense<0.000000e+00> : vector<8x128xf32>
    %32 = vector.multi_reduction <add>, %31, %cst_12 [0] : vector<2x8x128xf32> to vector<8x128xf32>
    %c0_13 = arith.constant 0 : index
    %c0_14 = arith.constant 0 : index
    %33 = vector.load %arg5[%c0_13, %c0_14] : memref<8x128xf32, #tpu.memory_space<vmem>>, vector<8x128xf32>
    %34 = arith.addf %33, %32 : vector<8x128xf32>
    %c0_15 = arith.constant 0 : index
    %c0_16 = arith.constant 0 : index
    %35 = vector.load %arg5[%c0_15, %c0_16] : memref<8x128xf32, #tpu.memory_space<vmem>>, vector<8x128xf32>
    tpu.vector_store %arg5[%c0_15, %c0_16], %34 {strides = array<i32>} : memref<8x128xf32, #tpu.memory_space<vmem>>, vector<8x128xf32>,
    %c0_i32_17 = arith.constant 0 : i32
    %36 = arith.cmpi eq, %arg1, %c0_i32_17 : i32
    %37 = arith.extui %36 : i1 to i32
    %c0_i32_18 = arith.constant 0 : i32
    %38 = arith.cmpi ne, %37, %c0_i32_18 : i32
    scf.if %38 {
      %c0_19 = arith.constant 0 : index
      %c0_20 = arith.constant 0 : index
      %39 = vector.load %arg5[%c0_19, %c0_20] : memref<8x128xf32, #tpu.memory_space<vmem>>, vector<8x128xf32>
      %40 = vector.shape_cast %39 : vector<8x128xf32> to vector<1x8x128xf32>
      %cst_21 = arith.constant dense<0.000000e+00> : vector<1xf32>
      %41 = vector.multi_reduction <add>, %40, %cst_21 [1, 2] : vector<1x8x128xf32> to vector<1xf32>
      %42 = vector.shape_cast %41 : vector<1xf32> to vector<1x1x1xf32>
      %43 = vector.extract %42[0, 0, 0] : f32 from vector<1x1x1xf32>
      %44 = vector.broadcast %43 : f32 to vector<1x1x1xf32>
      %c0_22 = arith.constant 0 : index
      %c0_23 = arith.constant 0 : index
      %c0_24 = arith.constant 0 : index
      %45 = vector.load %arg4[%c0_22, %c0_23, %c0_24] : memref<1x1x1xf32, #tpu.memory_space<vmem>>, vector<1x1x1xf32>
      tpu.vector_store %arg4[%c0_22, %c0_23, %c0_24], %44 {strides = array<i32>} : memref<1x1x1xf32, #tpu.memory_space<vmem>>, vector<1x1x1xf32>,
    } else {
    }
    return
  }
  func.func @transform_0(%arg0: i32, %arg1: i32) -> (i32, i32) {
    %c1_i32 = arith.constant 1 : i32
    %0 = arith.muli %arg0, %c1_i32 : i32
    %1 = arith.addi %0, %arg1 : i32
    %c0_i32 = arith.constant 0 : i32
    %c0_i32_0 = arith.constant 0 : i32
    return %1, %c0_i32 : i32, i32
  }
  func.func @transform_1(%arg0: i32, %arg1: i32) -> (i32, i32) {
    %c1_i32 = arith.constant 1 : i32
    %0 = arith.muli %arg0, %c1_i32 : i32
    %1 = arith.addi %0, %arg1 : i32
    %c0_i32 = arith.constant 0 : i32
    %c0_i32_0 = arith.constant 0 : i32
    return %1, %c0_i32 : i32, i32
  }
  func.func @transform_2(%arg0: i32, %arg1: i32) -> (i32, i32, i32) {
    %c0_i32 = arith.constant 0 : i32
    %c0_i32_0 = arith.constant 0 : i32
    %c0_i32_1 = arith.constant 0 : i32
    return %arg0, %c0_i32, %c0_i32_0 : i32, i32, i32
  }
}

</mosaic_0001>

<bundles_post_ra>
// kernel: tpu_custom_call.1
= control target key start
LH: loop header
LB: loop body
LE: loop exit
PB: predicated region body
PF: predicated region fallthrough
CT: control target
= control target key end

     0   :  { %7 = vsyncpa [#allocation4], 0  ;;  %s290_s0 = inlined_call_operand.hbm [shape: f32[16,128], index: 0, kind: input, shape index: {}]   ;;  %s291_s1 = inlined_call_operand.hbm [shape: s8[16,128], index: 1, kind: input, shape index: {}]   ;;  %s292_s2 = inlined_call_operand.hbm [shape: f32[1,1,1], index: 2, kind: output, shape index: {}]  }
   0x1   :  { %8 = vsyncpa [#allocation7], 0 }
   0x2   :  { %9 = vsyncpa [#allocation5], 0  ;;  %s228_s9 = smov [#allocation3]   ;;  %s156_s13 = scalar_lea.hbm %s290_s0, 256 }
   0x3   :  { %s19_s10 = sshll.u32 %s228_s9, 4  ;;  %p157_p0 = scmp.ne.s32.totalorder %s290_s0, %s156_s13  ;;  %s20_s10 = int_to_ptr.vmem [resolvable:$true] %s19_s10 }
   0x4   :  { %p160_p1 = scmp.lt.u32.totalorder %s156_s13, %s290_s0 }
   0x6   :  { %p162_p2 = pnand %p160_p1, %p157_p0 }
   0x8   :  { %165 = shalt.err (!%p162_p2)
}
   0x9   :  { %s166_s18 = scalar_lea.vmem %s20_s10, 256  ;;  %p171_p4 = scmp.lt.s32.totalorder %s20_s10, %s20_s10 }
   0xa   :  { %p167_p3 = scmp.ne.s32.totalorder %s20_s10, %s166_s18  ;;  %p172_p5 = scmp.lt.s32.totalorder %s166_s18, %s166_s18 }
   0xc   :  { %p173_p6 = por %p172_p5, %p171_p4 }
   0xe   :  { %p174_p7 = pnand %p173_p6, %p167_p3 }
  0x10   :  { %177 = shalt.err (!%p174_p7)
}
  0x11   :  { %s229_s19 = smov 128   ;;  %s230_s20 = smov 8  }
  0x12   :  { %25 = dma.hbm_to_vmem [thread:$0]  %s290_s0, 256, %s20_s10, [#allocation4], %s229_s19, %s229_s19, %s230_s20  }
  0x13   :  { %s231_s23 = smov [#allocation6]   ;;  %s178_s27 = scalar_lea.hbm %s291_s1, 64 }
  0x14   :  { %s35_s24 = sshll.u32 %s231_s23, 4  ;;  %p179_p8 = scmp.ne.s32.totalorder %s291_s1, %s178_s27  ;;  %s36_s24 = int_to_ptr.vmem [resolvable:$true] %s35_s24 }
  0x15   :  { %p182_p9 = scmp.lt.u32.totalorder %s178_s27, %s291_s1 }
  0x17   :  { %p184_p10 = pnand %p182_p9, %p179_p8 }
  0x19   :  { %187 = shalt.err (!%p184_p10)
}
  0x1a   :  { %s188_s4 = scalar_lea.vmem %s36_s24, 64  ;;  %p193_p12 = scmp.lt.s32.totalorder %s36_s24, %s36_s24 }
  0x1b   :  { %p189_p11 = scmp.ne.s32.totalorder %s36_s24, %s188_s4  ;;  %p194_p13 = scmp.lt.s32.totalorder %s188_s4, %s188_s4 }
  0x1d   :  { %p195_p0 = por %p194_p13, %p193_p12 }
  0x1f   :  { %p196_p1 = pnand %p195_p0, %p189_p11 }
  0x21   :  { %199 = shalt.err (!%p196_p1)
}
  0x22   :  { %s232_s0 = smov 32   ;;  %s233_s5 = smov 2  }
  0x23   :  { %41 = dma.hbm_to_vmem [thread:$0]  %s291_s1, 64, %s36_s24, [#allocation7], %s232_s0, %s232_s0, %s233_s5  }
  0x24   :  { %222 = dma.done.wait [#allocation4], 256  }
  0x25   :  { %223 = vsyncadd [#allocation4], 4294967040 }
  0x26   :  { %224 = dma.done.wait [#allocation7], 64  }
  0x27   :  { %225 = vsyncadd [#allocation7], 4294967232  ;;  %v57_v0 = vld [vmem:[#allocation3] sm:$0xff]  ;;  %v58_v1 = vld [vmem:[#allocation3 + $0x8] sm:$0xff]  ;;  %s234_s1 = smov [#allocation8]   ;;  %vm117_vm2 = vcmask 0  }
  0x28   :  { %v67_v2 = vmul.f32 0.5, %v57_v0  ;;  %v68_v3 = vmul.f32 0.5, %v58_v1  ;;  %v136_v4 = vld [vmem:[#allocation6] sm:$0xf]   ;;  %s125_s8 = sshll.u32 %s234_s1, 4  ;;  %s126_s8 = int_to_ptr.vmem [resolvable:$true] %s125_s8 }
  0x29   :  { %v137_v6 = vunpack.c.0.s8 %v136_v4  ;;  %v138_v8 = vunpack.c.1.s8 %v136_v4  ;;  %s200_s10 = scalar_lea.vmem %s126_s8, 16  ;;  %s204_s11 = scalar_lea.vmem %s126_s8, 32 }
  0x2a   :  { %148 = vtanh.f32 %v67_v2  ;;  %p201_p2 = scmp.ne.s32.totalorder %s126_s8, %s200_s10  ;;  %p205_p3 = scmp.lt.s32.totalorder %s126_s8, %s126_s8 }
  0x2b   :  { %150 = vtanh.f32 %v68_v3  ;;  %v63_v12 = vcvt.s32.f32 %v137_v6  ;;  %v64_v14 = vcvt.s32.f32 %v138_v8  ;;  %p206_p4 = scmp.lt.s32.totalorder %s204_s11, %s200_s10 }
  0x2d   :  { %vm65_vm0 = vcmp.gt.f32.partialorder %v63_v12, 0.0  ;;  %vm66_vm1 = vcmp.gt.f32.partialorder %v64_v14, 0.0  ;;  %p207_p5 = por %p206_p4, %p205_p3 }
  0x2f   :  { %p208_p6 = pnand %p207_p5, %p201_p2 }
  0x34   :  { %v149_v5 = vpop.eup %148 }
  0x35   :  { %v151_v7 = vpop.eup %150  ;;  %v71_v9 = vadd.f32 1.0, %v149_v5 }
  0x36   :  { %v72_v10 = vadd.f32 1.0, %v151_v7 }
  0x37   :  { %v73_v11 = vmul.f32 0.5, %v71_v9 }
  0x38   :  { %v74_v13 = vmul.f32 0.5, %v72_v10 }
  0x39   :  { %v75_v15 = vsub.f32 1.0, %v73_v11 }
  0x3a   :  { %v76_v16 = vsub.f32 1.0, %v74_v13 }
  0x3b   :  { %v77_v17 = vadd.f32 0.05, %v75_v15 }
  0x3c   :  { %v78_v18 = vadd.f32 0.05, %v76_v16 }
  0x3d   :  { %v79_v19 = vmin.f32 %v77_v17, 1.0 }
  0x3e   :  { %v80_v20 = vmin.f32 %v78_v18, 1.0 }
  0x3f   :  { %v81_v21 = vsel %vm65_vm0, %v73_v11, %v79_v19 }
  0x40   :  { %v82_v22 = vsel %vm66_vm1, %v74_v13, %v80_v20  ;;  %v83_v23 = vmax.f32 %v81_v21, 1e-08  ;;  %v89_v24 = vsub.f32 1.0, %v81_v21 }
  0x41   :  { %v84_v25 = vmax.f32 %v82_v22, 1e-08  ;;  %v90_v26 = vsub.f32 1.0, %v82_v22 }
  0x42   :  { %152 = vlog2.f32 %v83_v23  ;;  %v91_v27 = vmul.f32 %v89_v24, %v89_v24 }
  0x43   :  { %154 = vlog2.f32 %v84_v25  ;;  %v92_v28 = vmul.f32 %v90_v26, %v90_v26 }
  0x44   :  { %v93_v29 = vmul.f32 %v91_v27, %v91_v27 }
  0x45   :  { %v94_v30 = vmul.f32 %v92_v28, %v92_v28 }
  0x46   :  { %v95_v32 = vsel %vm65_vm0, %v89_v24, %v93_v29 }
  0x47   :  { %v96_v35 = vsel %vm66_vm1, %v90_v26, %v94_v30 }
  0x4c   :  { %v153_v31 = vpop.eup %152 }
  0x4d   :  { %v155_v33 = vpop.eup %154  ;;  %v86_v34 = vmul.f32 0.6931472, %v153_v31 }
  0x4e   :  { %v88_v36 = vmul.f32 0.6931472, %v155_v33 }
  0x4f   :  { %v97_v37 = vmul.f32 %v95_v32, %v86_v34 }
  0x50   :  { %v98_v38 = vmul.f32 %v96_v35, %v88_v36 }
  0x52   :  { %v99_v39 = vadd.f32 %v98_v38, %v97_v37 }
  0x54   :  { %107 = vadd.xlane.f32.xlu0 %v99_v39 }
  0xe1   :  { %v108_v40 = vpop.xlane.xlu0 %107 }
  0xe2   :  { %v109_v41 = vrot.slane %v108_v40, 4 }
  0xe4   :  { %v110_v42 = vadd.f32 %v109_v41, %v108_v40 }
  0xe6   :  { %v111_v43 = vrot.slane %v110_v42, 2 }
  0xe8   :  { %v112_v44 = vadd.f32 %v111_v43, %v110_v42 }
  0xea   :  { %v113_v45 = vrot.slane %v112_v44, 1 }
  0xec   :  { %v114_v46 = vadd.f32 %v113_v45, %v112_v44 }
  0xee   :  { %139 = vpush %v114_v46 }
 0x11f   :  { %s140_s9 = spop %139 }
 0x120   :  { %v116_v47 = vstv %s140_s9 }
 0x121   :  { %118 = vst.msk [vmem:[#allocation8] sm:$0x1] %vm117_vm2, %v116_v47 }
 0x122   :  { %211 = shalt.err (!%p208_p6)
}
 0x123   :  { %s212_s14 = scalar_lea.hbm %s292_s2, 16 }
 0x124   :  { %p213_p7 = scmp.ne.s32.totalorder %s292_s2, %s212_s14  ;;  %p216_p8 = scmp.lt.u32.totalorder %s212_s14, %s292_s2 }
 0x126   :  { %p218_p9 = pnand %p216_p8, %p213_p7 }
 0x128   :  { %221 = shalt.err (!%p218_p9)
}
 0x129   :  { %128 = dma.vmem_to_hbm [thread:$0]  %s126_s8, 16, %s292_s2, [#allocation5]  }
 0x12a   :  { %226 = dma.done.wait [#allocation5], 16  }
 0x12b   :  { %227 = vsyncadd [#allocation5], 4294967280 }
 0x12c   :  { %132 = vsyncpa [#allocation4], 1 }
 0x12d   :  { %133 = vsyncpa [#allocation7], 1 }
 0x12e   :  { %134 = vsyncpa [#allocation5], 1 }

</bundles_post_ra>
